<compile_context>
chip_gen: v7x
topology: tpu7x:2x2x1
jax: 0.10.0
libtpu: 0.0.40
codegen_flags: <defaults>
</compile_context>

<pallas_src>
import jax
import jax.numpy as jnp
from jax.experimental import pallas as pl
from jax.experimental.pallas import tpu as pltpu


LANES = 1024                          # lane-dense last dim (multiple of 128)
TR_MAX = 1024                         # max row tile -> 4 MiB f32 blocks
FUSED_MAX_BYTES = 4 * 1024 * 1024     # fused single-block fast-path threshold
VMEM_LIMIT = 40 * 1024 * 1024         # scoped VMEM for the tiled path


def _round_up(a, b):
    return ((a + b - 1) // b) * b


def _cdiv(a, b):
    return -(-a // b)


# Optional 3-deep input buffering (skip gracefully on JAX versions without
# BlockSpec(pipeline_mode=...)).
try:
    _BUF3 = dict(pipeline_mode=pl.Buffered(3))
    pl.BlockSpec((8, 128), lambda i: (i, 0), **_BUF3)   # probe at import time
except Exception:  # pragma: no cover - older JAX
    _BUF3 = {}


# ----------------------------------------------------------------------------
# Fused fast path: whole array is one VMEM block (grid = ()).
# ----------------------------------------------------------------------------
def _fused_kernel(x_ref, o_ref):
    x = x_ref[...]
    # min/max are exact in the native dtype; cast only the two scalars.
    mn = jnp.min(x).astype(jnp.float32)
    mx = jnp.max(x).astype(jnp.float32)
    scale = 1.0 / (mx - mn)            # single divide (NaN for constant input,
                                       # same as the raw PyTorch expression)
    o_ref[...] = ((x.astype(jnp.float32) - mn) * scale).astype(o_ref.dtype)


# ----------------------------------------------------------------------------
# Pass 1: global min / max reduction (+ hoisted scale = 1/(max-min)).
# (8, LANES) accumulators are updated with pure VPU elementwise min/max per
# grid step; XLU reduce + divide happen only on the last step.
# ----------------------------------------------------------------------------
def _minmax_kernel(x_ref, mn_ref, scale_ref, min_acc, max_acc):
    i = pl.program_id(0)
    x = x_ref[...]                                   # (tr, LANES), native dtype
    tr = x.shape[0]
    x3 = x.reshape(tr // 8, 8, LANES)                # layout-friendly reshape
    blk_min = jnp.min(x3, axis=0)                    # (8, LANES), VPU only
    blk_max = jnp.max(x3, axis=0)

    @pl.when(i == 0)
    def _():
        min_acc[...] = blk_min
        max_acc[...] = blk_max

    @pl.when(i > 0)
    def _():
        min_acc[...] = jnp.minimum(min_acc[...], blk_min)
        max_acc[...] = jnp.maximum(max_acc[...], blk_max)

    @pl.when(i == pl.num_programs(0) - 1)
    def _():
        mn = jnp.min(min_acc[...]).astype(jnp.float32)   # XLU reduce, once
        mx = jnp.max(max_acc[...]).astype(jnp.float32)
        mn_ref[0, 0] = mn
        scale_ref[0, 0] = 1.0 / (mx - mn)                # single exact divide


# ----------------------------------------------------------------------------
# Pass 2: elementwise (x - mn) * scale with the scalars held in SMEM.
# ----------------------------------------------------------------------------
def _normalize_kernel(mn_ref, scale_ref, x_ref, o_ref):
    mn = mn_ref[0, 0]
    scale = scale_ref[0, 0]
    o_ref[...] = ((x_ref[...].astype(jnp.float32) - mn) * scale).astype(o_ref.dtype)


def _choose_row_tile(rows):
    """Adaptive row tile: bounded padding; prefer an exact divisor of rows."""
    ntiles = _cdiv(rows, TR_MAX)
    tr = _round_up(_cdiv(rows, ntiles), 8)
    if rows % tr != 0 and rows % 8 == 0:
        # Look for a divisor of rows that is a multiple of 8 and >= tr/2 so the
        # pad / un-pad copies disappear without shrinking the tile too much.
        d = tr
        while d >= 8 and 2 * d >= tr:
            if rows % d == 0:
                return d
            d -= 8
    return tr


def minmax_normalize(x, *, fused_max_bytes=FUSED_MAX_BYTES):
    """(x - x.min()) / (x.max() - x.min()) over the whole tensor."""
    orig_shape = x.shape
    total = x.size
    itemsize = jnp.dtype(x.dtype).itemsize
    # Floating inputs keep their dtype; ints promote to f32 (PyTorch true-div).
    out_dtype = x.dtype if jnp.issubdtype(x.dtype, jnp.floating) else jnp.float32
    out_itemsize = jnp.dtype(out_dtype).itemsize

    xf = x.reshape(-1)

    # ------------------------------------------------------------------ fused
    if total * itemsize <= fused_max_bytes:
        c = LANES if total >= LANES else 128
        padded_total = _round_up(total, c)
        if padded_total != total:
            # Edge padding replicates an existing element -> min/max unchanged.
            xf = jnp.pad(xf, (0, padded_total - total), mode="edge")
        x2d = xf.reshape(padded_total // c, c)
        y2d = pl.pallas_call(
            _fused_kernel,
            out_shape=jax.ShapeDtypeStruct(x2d.shape, out_dtype),
            cost_estimate=pl.CostEstimate(
                flops=4 * padded_total,
                transcendentals=0,
                bytes_accessed=padded_total * (itemsize + out_itemsize),
            ),
        )(x2d)
        y = y2d.reshape(-1)
        if padded_total != total:
            y = y[:total]
        return y.reshape(orig_shape)

    # ------------------------------------------------------------- tiled path
    rows = _cdiv(total, LANES)
    tr = _choose_row_tile(rows)
    rows_p = _round_up(rows, tr)
    padded_total = rows_p * LANES
    padded = padded_total != total
    if padded:
        xf = jnp.pad(xf, (0, padded_total - total), mode="edge")
    x2d = xf.reshape(rows_p, LANES)
    grid = (rows_p // tr,)

    # ---- pass 1: global min / scale -----------------------------------------
    mn, scale = pl.pallas_call(
        _minmax_kernel,
        out_shape=(
            jax.ShapeDtypeStruct((1, 1), jnp.float32),
            jax.ShapeDtypeStruct((1, 1), jnp.float32),
        ),
        grid_spec=pltpu.PrefetchScalarGridSpec(
            num_scalar_prefetch=0,
            grid=grid,
            in_specs=[pl.BlockSpec((tr, LANES), lambda i: (i, 0), **_BUF3)],
            out_specs=(
                pl.BlockSpec((1, 1), lambda i: (0, 0), memory_space=pltpu.SMEM),
                pl.BlockSpec((1, 1), lambda i: (0, 0), memory_space=pltpu.SMEM),
            ),
            scratch_shapes=[
                pltpu.VMEM((8, LANES), x.dtype),
                pltpu.VMEM((8, LANES), x.dtype),
            ],
        ),
        compiler_params=pltpu.CompilerParams(
            dimension_semantics=("arbitrary",),
            vmem_limit_bytes=VMEM_LIMIT,
        ),
        cost_estimate=pl.CostEstimate(
            flops=2 * padded_total,
            transcendentals=0,
            bytes_accessed=padded_total * itemsize + 8,
        ),
    )(x2d)

    # ---- pass 2: elementwise normalization -----------------------------------
    # Reuse the fresh padded copy's HBM buffer for the output (never alias the
    # caller's array).
    alias = {2: 0} if (padded and out_dtype == x.dtype) else {}
    y2d = pl.pallas_call(
        _normalize_kernel,
        out_shape=jax.ShapeDtypeStruct((rows_p, LANES), out_dtype),
        grid_spec=pltpu.PrefetchScalarGridSpec(
            num_scalar_prefetch=0,
            grid=grid,
            in_specs=[
                pl.BlockSpec((1, 1), lambda i: (0, 0), memory_space=pltpu.SMEM),
                pl.BlockSpec((1, 1), lambda i: (0, 0), memory_space=pltpu.SMEM),
                pl.BlockSpec((tr, LANES), lambda i: (i, 0), **_BUF3),
            ],
            out_specs=pl.BlockSpec((tr, LANES), lambda i: (i, 0)),
        ),
        compiler_params=pltpu.CompilerParams(
            dimension_semantics=("parallel",),
            vmem_limit_bytes=VMEM_LIMIT,
        ),
        input_output_aliases=alias,
        cost_estimate=pl.CostEstimate(
            flops=2 * padded_total,
            transcendentals=0,
            bytes_accessed=padded_total * (itemsize + out_itemsize),
        ),
    )(mn, scale, x2d)

    y = y2d.reshape(-1)
    if padded:
        y = y[:total]
    return y.reshape(orig_shape)


if __name__ == "__main__":
    key = jax.random.PRNGKey(0)
    # Small NCHW input consistent with the module's usage (mel-spectrogram-ish).
    x = jax.random.normal(key, (2, 4, 16, 16), dtype=jnp.float32) * 3.0 + 1.5

    ref = (x - x.min()) / (x.max() - x.min())

    # Fused single-block fast path (default for small inputs).
    y_fused = jax.block_until_ready(minmax_normalize(x))
    assert y_fused.shape == x.shape and y_fused.dtype == x.dtype
    assert jnp.allclose(y_fused, ref, atol=2e-6, rtol=1e-6), "fused path mismatch"

    # Tiled two-pass path (forced; exercises padding, SMEM scalars, aliasing).
    y_tiled = jax.block_until_ready(minmax_normalize(x, fused_max_bytes=0))
    assert y_tiled.shape == x.shape and y_tiled.dtype == x.dtype
    assert jnp.allclose(y_tiled, ref, atol=2e-6, rtol=1e-6), "tiled path mismatch"

    print("KERNEL_OK")
</pallas_src>

<mosaic_0001>
module attributes {stable_mosaic.version = 11 : i64} {
  func.func @_fused_kernel(%arg0: memref<2x1024xf32, #tpu.memory_space<vmem>>, %arg1: memref<2x1024xf32, #tpu.memory_space<vmem>>) attributes {dimension_semantics = [], scalar_prefetch = 0 : i64, scratch_operands = 0 : i64, tpu.core_type = #tpu.core_type<tc>} {
    %c0 = arith.constant 0 : index
    %c0_0 = arith.constant 0 : index
    %0 = vector.load %arg0[%c0, %c0_0] : memref<2x1024xf32, #tpu.memory_space<vmem>>, vector<2x1024xf32>
    %1 = vector.shape_cast %0 : vector<2x1024xf32> to vector<1x2x1024xf32>
    %cst = arith.constant dense<0x7F800000> : vector<1xf32>
    %2 = vector.multi_reduction <minimumf>, %1, %cst [1, 2] : vector<1x2x1024xf32> to vector<1xf32>
    %3 = vector.shape_cast %2 : vector<1xf32> to vector<1x1x1xf32>
    %4 = vector.extract %3[0, 0, 0] : f32 from vector<1x1x1xf32>
    %5 = vector.shape_cast %0 : vector<2x1024xf32> to vector<1x2x1024xf32>
    %cst_1 = arith.constant dense<0xFF800000> : vector<1xf32>
    %6 = vector.multi_reduction <maximumf>, %5, %cst_1 [1, 2] : vector<1x2x1024xf32> to vector<1xf32>
    %7 = vector.shape_cast %6 : vector<1xf32> to vector<1x1x1xf32>
    %8 = vector.extract %7[0, 0, 0] : f32 from vector<1x1x1xf32>
    %9 = arith.subf %8, %4 : f32
    %cst_2 = arith.constant 1.000000e+00 : f32
    %10 = arith.divf %cst_2, %9 : f32
    %11 = vector.broadcast %4 : f32 to vector<2x1024xf32>
    %12 = arith.subf %0, %11 : vector<2x1024xf32>
    %13 = vector.broadcast %10 : f32 to vector<2x1024xf32>
    %14 = arith.mulf %12, %13 : vector<2x1024xf32>
    %c0_3 = arith.constant 0 : index
    %c0_4 = arith.constant 0 : index
    %15 = vector.load %arg1[%c0_3, %c0_4] : memref<2x1024xf32, #tpu.memory_space<vmem>>, vector<2x1024xf32>
    tpu.vector_store %arg1[%c0_3, %c0_4], %14 {strides = array<i32>} : memref<2x1024xf32, #tpu.memory_space<vmem>>, vector<2x1024xf32>,
    return
  }
}

</mosaic_0001>

<bundles_post_ra>
// kernel: tpu_custom_call.1
= control target key start
LH: loop header
LB: loop body
LE: loop exit
PB: predicated region body
PF: predicated region fallthrough
CT: control target
= control target key end

     0   :  { %6 = vsyncpa [#allocation3], 0  ;;  %s269_s0 = inlined_call_operand.hbm [shape: f32[2,1024], index: 0, kind: input, shape index: {}]   ;;  %s270_s1 = inlined_call_operand.hbm [shape: f32[2,1024], index: 1, kind: output, shape index: {}]  }
   0x1   :  { %7 = vsyncpa [#allocation4], 0  ;;  %s204_s6 = smov [#allocation2]   ;;  %s156_s10 = scalar_lea.hbm %s269_s0, 256 }
   0x2   :  { %s14_s7 = sshll.u32 %s204_s6, 4  ;;  %p157_p0 = scmp.ne.s32.totalorder %s269_s0, %s156_s10  ;;  %s15_s7 = int_to_ptr.vmem [resolvable:$true] %s14_s7 }
   0x3   :  { %p160_p1 = scmp.lt.u32.totalorder %s156_s10, %s269_s0 }
   0x5   :  { %p162_p2 = pnand %p160_p1, %p157_p0 }
   0x7   :  { %165 = shalt.err (!%p162_p2)
}
   0x8   :  { %s166_s15 = scalar_lea.vmem %s15_s7, 256  ;;  %p171_p4 = scmp.lt.s32.totalorder %s15_s7, %s15_s7 }
   0x9   :  { %p167_p3 = scmp.ne.s32.totalorder %s15_s7, %s166_s15  ;;  %p172_p5 = scmp.lt.s32.totalorder %s166_s15, %s166_s15 }
   0xb   :  { %p173_p6 = por %p172_p5, %p171_p4 }
   0xd   :  { %p174_p7 = pnand %p173_p6, %p167_p3 }
   0xf   :  { %177 = shalt.err (!%p174_p7)
}
  0x10   :  { %17 = dma.hbm_to_vmem [thread:$0]  %s269_s0, 256, %s15_s7, [#allocation3]  }
  0x11   :  { %200 = dma.done.wait [#allocation3], 256  }
  0x12   :  { %201 = vsyncadd [#allocation3], 4294967040  ;;  %v29_v0 = vlaneseq  ;;  %v205_v1 = vmov 1983009808   ;;  %v229_v6 = vld [vmem:[#allocation2] sm:$0xff]  ;;  %v231_v7 = vld [vmem:[#allocation2 + $0x8] sm:$0xff] }
  0x13   :  { %v27_v2 = vunpack.c.l.s4 %v205_v1  ;;  %vm67_vm0 = vcmask 1041408   ;;  %v25_v8 = vcombine.high %v229_v6, %v229_v6  ;;  %v42_v10 = vcombine.high %v231_v7, %v231_v7  ;;  %s206_s20 = smov [#allocation5]  }
  0x14   :  { %v30_v3 = vshrl.u32 %v29_v0, 7  ;;  %s134_s21 = sshll.u32 %s206_s20, 4  ;;  %s135_s21 = int_to_ptr.vmem [resolvable:$true] %s134_s21 }
  0x15   :  { %v28_v4 = vunpack.c.0.s8 %v27_v2  ;;  %s178_s23 = scalar_lea.vmem %s135_s21, 256  ;;  %p183_p9 = scmp.lt.s32.totalorder %s135_s21, %s135_s21 }
  0x16   :  { %p179_p8 = scmp.ne.s32.totalorder %s135_s21, %s178_s23  ;;  %p184_p10 = scmp.lt.s32.totalorder %s178_s23, %s178_s23 }
  0x17   :  { %v31_v5 = vsub.s32 %v28_v4, %v30_v3 }
  0x18   :  { %p185_p11 = por %p184_p10, %p183_p9 }
  0x19   :  { %v32_v9 = vrot.slane %v229_v6, %v31_v5  ;;  %v49_v11 = vrot.slane %v231_v7, %v31_v5  ;;  %v39_v12 = vrot.slane %v25_v8, %v31_v5  ;;  %v56_v14 = vrot.slane %v42_v10, %v31_v5 }
  0x1a   :  { %p186_p12 = pnand %p185_p11, %p179_p8 }
  0x1b   :  { %v40_v13 = vcombine.high %v32_v9, %v32_v9  ;;  %v57_v15 = vcombine.high %v49_v11, %v49_v11  ;;  %v68_v16 = vsel %vm67_vm0, %v32_v9, inf  ;;  %v72_v17 = vsel %vm67_vm0, %v49_v11, inf }
  0x1c   :  { %v92_v18 = vsel %vm67_vm0, %v32_v9, -inf  ;;  %v96_v19 = vsel %vm67_vm0, %v49_v11, -inf  ;;  %v41_v20 = vcombine.high %v39_v12, %v39_v12  ;;  %v58_v21 = vcombine.high %v56_v14, %v56_v14 }
  0x1d   :  { %v69_v22 = vsel %vm67_vm0, %v40_v13, inf  ;;  %v70_v23 = vsel %vm67_vm0, %v39_v12, inf  ;;  %v73_v24 = vmin.f32 %v68_v16, %v72_v17  ;;  %v74_v25 = vsel %vm67_vm0, %v57_v15, inf }
  0x1e   :  { %v76_v26 = vsel %vm67_vm0, %v56_v14, inf  ;;  %v93_v27 = vsel %vm67_vm0, %v40_v13, -inf  ;;  %v71_v28 = vsel %vm67_vm0, %v41_v20, inf  ;;  %v75_v29 = vmin.f32 %v69_v22, %v74_v25 }
  0x1f   :  { %v77_v30 = vmin.f32 %v70_v23, %v76_v26  ;;  %v78_v31 = vsel %vm67_vm0, %v58_v21, inf  ;;  %v94_v33 = vsel %vm67_vm0, %v39_v12, -inf  ;;  %v95_v34 = vsel %vm67_vm0, %v41_v20, -inf }
  0x20   :  { %v79_v32 = vmin.f32 %v71_v28, %v78_v31  ;;  %v97_v35 = vmax.f32 %v92_v18, %v96_v19  ;;  %v80_v36 = vmin.f32 %v73_v24, %v75_v29  ;;  %v98_v37 = vsel %vm67_vm0, %v57_v15, -inf }
  0x21   :  { %v100_v38 = vsel %vm67_vm0, %v56_v14, -inf  ;;  %v102_v39 = vsel %vm67_vm0, %v58_v21, -inf  ;;  %v99_v41 = vmax.f32 %v93_v27, %v98_v37 }
  0x22   :  { %v81_v40 = vmin.f32 %v77_v30, %v79_v32  ;;  %v101_v42 = vmax.f32 %v94_v33, %v100_v38  ;;  %v103_v43 = vmax.f32 %v95_v34, %v102_v39 }
  0x23   :  { %v104_v45 = vmax.f32 %v97_v35, %v99_v41 }
  0x24   :  { %v82_v44 = vmin.f32 %v80_v36, %v81_v40  ;;  %v105_v46 = vmax.f32 %v101_v42, %v103_v43 }
  0x26   :  { %83 = vmin.xlane.f32.xlu0 %v82_v44  ;;  %v106_v47 = vmax.f32 %v104_v45, %v105_v46 }
  0x2a   :  { %107 = vmax.xlane.f32.xlu0 %v106_v47 }
  0xb3   :  { %v84_v48 = vpop.xlane.xlu0 %83 }
  0xb4   :  { %v85_v49 = vrot.slane %v84_v48, 4 }
  0xb6   :  { %v86_v50 = vmin.f32 %v84_v48, %v85_v49 }
  0xb7   :  { %v108_v51 = vpop.xlane.xlu0 %107 }
  0xb8   :  { %v87_v52 = vrot.slane %v86_v50, 2  ;;  %v109_v53 = vrot.slane %v108_v51, 4 }
  0xba   :  { %v110_v54 = vmax.f32 %v108_v51, %v109_v53  ;;  %v88_v55 = vmin.f32 %v86_v50, %v87_v52 }
  0xbc   :  { %v111_v56 = vrot.slane %v110_v54, 2  ;;  %v89_v57 = vrot.slane %v88_v55, 1 }
  0xbe   :  { %v112_v58 = vmax.f32 %v110_v54, %v111_v56  ;;  %v90_v59 = vmin.f32 %v88_v55, %v89_v57 }
  0xc0   :  { %143 = vpush %v90_v59  ;;  %v113_v60 = vrot.slane %v112_v58, 1 }
  0xc2   :  { %v114_v61 = vmax.f32 %v112_v58, %v113_v60 }
  0xc4   :  { %145 = vpush %v114_v61 }
  0xf1   :  { %s144_s0 = spop %143 }
  0xf2   :  { %v120_v0 = vstv %s144_s0 }
  0xf3   :  { %v121_v1 = vsub.f32 %v229_v6, %v120_v0  ;;  %v122_v2 = vsub.f32 %v231_v7, %v120_v0 }
  0xf5   :  { %s146_s18 = spop %145 }
  0xf6   :  { %s116_s19 = ssub.f32 %s146_s18, %s144_s0 }
  0xf8   :  { %v117_v62 = vstv %s116_s19 }
  0xf9   :  { %154 = vrcp.f32 %v117_v62 }
 0x103   :  { %v155_v63 = vpop.eup %154 }
 0x104   :  { %147 = vpush %v155_v63 }
 0x135   :  { %s148_s22 = spop %147 }
 0x136   :  { %v123_v3 = vstv %s148_s22 }
 0x137   :  { %v124_v4 = vmul.f32 %v123_v3, %v121_v1  ;;  %v125_v5 = vmul.f32 %v123_v3, %v122_v2 }
 0x139   :  { %126 = vst [vmem:[#allocation5] sm:$0xff] %v124_v4  ;;  %127 = vst [vmem:[#allocation5 + $0x8] sm:$0xff] %v125_v5 }
 0x13a   :  { %189 = shalt.err (!%p186_p12)
}
 0x13b   :  { %s190_s26 = scalar_lea.hbm %s270_s1, 256 }
 0x13c   :  { %p191_p13 = scmp.ne.s32.totalorder %s270_s1, %s190_s26  ;;  %p194_p0 = scmp.lt.u32.totalorder %s190_s26, %s270_s1 }
 0x13e   :  { %p196_p1 = pnand %p194_p0, %p191_p13 }
 0x140   :  { %199 = shalt.err (!%p196_p1)
}
 0x141   :  { %137 = dma.vmem_to_hbm [thread:$0]  %s135_s21, 256, %s270_s1, [#allocation4]  }
 0x142   :  { %202 = dma.done.wait [#allocation4], 256  }
 0x143   :  { %203 = vsyncadd [#allocation4], 4294967040 }
 0x144   :  { %141 = vsyncpa [#allocation3], 1 }
 0x145   :  { %142 = vsyncpa [#allocation4], 1 }

</bundles_post_ra>
